<compile_context>
chip_gen: v6e
topology: v6e:2x2x1
jax: 0.10.0
libtpu: 0.0.40
codegen_flags: <defaults>
</compile_context>

<pallas_src>
import jax
import jax.numpy as jnp
from jax.experimental import pallas as pl
from jax.experimental.pallas import tpu as pltpu


def _round_up(x, m):
    return ((x + m - 1) // m) * m


def _adaptive_threshold_kernel(scalars_ref, x_ref, w1_ref, b1_ref, w2t_ref,
                               score_ref, out_ref):
    # scalars_ref: SMEM f32[3] = [running_mean, 1/sqrt(running_var+1e-8), b2]
    # x_ref:       [TB, D] image-feature tile (native dtype; cast in-kernel)
    # w1_ref:      [D, H]  bf16 first linear weight (in, out), grid-resident
    # b1_ref:      [1, H]  f32, grid-resident
    # w2t_ref:     [1, H]  f32 second linear weight (transposed), grid-resident
    # score_ref:   [1, TB] f32 anomaly scores (lane-dense)
    # out_ref:     [1, TB] f32 adjusted scores (lane-dense)
    mean = scalars_ref[0]
    inv_std = scalars_ref[1]
    b2 = scalars_ref[2]

    x = x_ref[...]
    if x.dtype != jnp.bfloat16:          # static on dtype; VPU cast on the tile
        x = x.astype(jnp.bfloat16)

    # Linear(D -> H) on the MXU: bf16 operands, f32 accumulation. Bias+ReLU on VPU.
    h = jnp.dot(x, w1_ref[...], preferred_element_type=jnp.float32)
    h = jnp.maximum(h + b1_ref[...], 0.0)                      # [TB, H] f32

    # Linear(H -> 1) as w2t @ h^T so the result is directly lane-dense [1, TB]
    # (no [TB,1] column + relayout).  Then sigmoid (EUP).
    t_row = jax.lax.dot_general(
        w2t_ref[...], h,
        dimension_numbers=(((1,), (1,)), ((), ())),
        preferred_element_type=jnp.float32) + b2               # [1, TB]
    t_row = jax.nn.sigmoid(t_row)

    # Score normalization with folded running stats + final sigmoid, all in the
    # row layout -> unmasked full-width stores.
    norm = (score_ref[...] - mean) * inv_std
    out_ref[...] = jax.nn.sigmoid(norm + t_row)


def prepare_params(w1, b1, w2, b2, running_mean, running_var):
    """One-time packing of module parameters/buffers for the kernel.

    Returns (w1_bf16[D,H], b1[1,H] f32, w2t[1,H] f32, scalars[3] f32) where
    scalars = [running_mean, 1/sqrt(running_var+1e-8), b2].
    """
    D, H = w1.shape
    w1_bf16 = w1.astype(jnp.bfloat16)
    b1_2d = b1.reshape(1, H).astype(jnp.float32)
    w2t = w2.astype(jnp.float32).reshape(1, H)
    inv_std = jax.lax.rsqrt(running_var.reshape(()).astype(jnp.float32) + 1e-8)
    scalars = jnp.stack([running_mean.reshape(()).astype(jnp.float32),
                         inv_std,
                         b2.reshape(()).astype(jnp.float32)])
    return w1_bf16, b1_2d, w2t, scalars


def adaptive_threshold_forward(anomaly_score, image_features, params, *,
                               block_b=2048):
    """anomaly_score: [B], image_features: [B, D] -> adjusted_score: [B]."""
    w1_bf16, b1_2d, w2t, scalars = params
    B, D = image_features.shape
    H = w1_bf16.shape[1]

    # Tile selection:
    #   * big tiles (>=512 rows when possible) for HBM roofline,
    #   * >=2 grid steps (>=4 for big batches) so v7x's two TensorCores both
    #     get work from the "parallel" batch axis,
    #   * pad only to the 256-row tile alignment (not a whole extra tile).
    n_tiles = pl.cdiv(B, block_b)
    if B >= 4 * 1024:
        n_tiles = max(n_tiles, 4)
    elif B >= 2 * 512:
        n_tiles = max(n_tiles, 2)
    tb = _round_up(pl.cdiv(B, n_tiles), 256)
    b_pad = n_tiles * tb

    x = image_features                       # bf16 cast happens in-kernel
    score_row = anomaly_score.astype(jnp.float32).reshape(1, B)
    if b_pad != B:
        x = jnp.pad(x, ((0, b_pad - B), (0, 0)))
        score_row = jnp.pad(score_row, ((0, 0), (0, b_pad - B)))

    grid = (b_pad // tb,)
    x_bytes = x.dtype.itemsize
    cost = pl.CostEstimate(
        flops=2 * b_pad * D * H + 2 * b_pad * H + 6 * b_pad,
        transcendentals=4 * b_pad,
        bytes_accessed=(b_pad * D * x_bytes + D * H * 2 + 2 * H * 4
                        + 2 * b_pad * 4 + 3 * 4),
    )

    # Scoped-VMEM need: double-buffered x + score/out tiles, resident weights,
    # headroom for the f32 h intermediate.  v5e's default cap is only 16 MiB,
    # so set the limit explicitly (still far below physical VMEM everywhere).
    vmem_bytes = (2 * tb * D * x_bytes          # x double buffer
                  + 2 * 2 * tb * 4              # score + out double buffers
                  + D * H * 2 + 2 * H * 4       # resident w1 / b1 / w2t
                  + tb * H * 4                  # h intermediate
                  + (4 << 20))                  # headroom
    vmem_limit = int(min(max(vmem_bytes, 16 << 20), 48 << 20))

    out_row = pl.pallas_call(
        _adaptive_threshold_kernel,
        out_shape=jax.ShapeDtypeStruct((1, b_pad), jnp.float32),
        grid=grid,
        in_specs=[
            pl.BlockSpec(memory_space=pltpu.MemorySpace.SMEM),   # scalars
            pl.BlockSpec((tb, D), lambda i: (i, 0)),             # x tile
            pl.BlockSpec((D, H), lambda i: (0, 0)),              # w1 (resident)
            pl.BlockSpec((1, H), lambda i: (0, 0)),              # b1 (resident)
            pl.BlockSpec((1, H), lambda i: (0, 0)),              # w2t (resident)
            pl.BlockSpec((1, tb), lambda i: (0, i)),             # score (lane-dense)
        ],
        out_specs=pl.BlockSpec((1, tb), lambda i: (0, i)),       # out (lane-dense)
        compiler_params=pltpu.CompilerParams(
            dimension_semantics=("parallel",),
            vmem_limit_bytes=vmem_limit),
        cost_estimate=cost,
    )(scalars, x, w1_bf16, b1_2d, w2t, score_row)

    return out_row[0, :B]


def init_params(key, feature_dim=512):
    """Deterministic init mimicking nn.Linear default (uniform +-1/sqrt(fan_in))."""
    hidden = feature_dim // 4
    k1, k2, k3, k4 = jax.random.split(key, 4)
    lim1 = 1.0 / jnp.sqrt(feature_dim)
    lim2 = 1.0 / jnp.sqrt(hidden)
    w1 = jax.random.uniform(k1, (feature_dim, hidden), jnp.float32, -lim1, lim1)
    b1 = jax.random.uniform(k2, (hidden,), jnp.float32, -lim1, lim1)
    w2 = jax.random.uniform(k3, (hidden, 1), jnp.float32, -lim2, lim2)
    b2 = jax.random.uniform(k4, (1,), jnp.float32, -lim2, lim2)
    running_mean = jnp.zeros((1,), jnp.float32)
    running_var = jnp.ones((1,), jnp.float32)
    return w1, b1, w2, b2, running_mean, running_var


if __name__ == "__main__":
    key = jax.random.PRNGKey(0)
    feature_dim = 512            # module default (hidden = 128)
    batch = 8

    kp, kx, ks = jax.random.split(key, 3)
    w1, b1, w2, b2, running_mean, running_var = init_params(kp, feature_dim)
    image_features = jax.random.normal(kx, (batch, feature_dim), jnp.float32)
    anomaly_score = jax.random.normal(ks, (batch,), jnp.float32)

    # One-time parameter packing (kept out of the per-call path).
    params = prepare_params(w1, b1, w2, b2, running_mean, running_var)

    # Feed f32 features: the bf16 cast now happens inside the kernel.
    out = adaptive_threshold_forward(anomaly_score, image_features, params)
    jax.block_until_ready(out)

    # Pure-JAX f32 reference (bf16 weights/activations -> loosened tolerance).
    t_ref = jax.nn.sigmoid(
        jnp.maximum(image_features @ w1 + b1, 0.0) @ w2 + b2).reshape(batch)
    n_ref = (anomaly_score - running_mean[0]) / jnp.sqrt(running_var[0] + 1e-8)
    ref = jax.nn.sigmoid(n_ref + t_ref)
    assert out.shape == (batch,)
    assert jnp.allclose(out, ref, atol=2e-2, rtol=2e-2), (out, ref)

    print("KERNEL_OK")
</pallas_src>

<mosaic_0001>
module attributes {stable_mosaic.version = 11 : i64} {
  func.func @_adaptive_threshold_kernel(%arg0: i32, %arg1: memref<3xf32, #tpu.memory_space<smem>>, %arg2: memref<256x512xf32, #tpu.memory_space<vmem>>, %arg3: memref<512x128xbf16, #tpu.memory_space<vmem>>, %arg4: memref<1x128xf32, #tpu.memory_space<vmem>>, %arg5: memref<1x128xf32, #tpu.memory_space<vmem>>, %arg6: memref<1x256xf32, #tpu.memory_space<vmem>>, %arg7: memref<1x256xf32, #tpu.memory_space<vmem>>) attributes {dimension_semantics = [#tpu.dimension_semantics<parallel>], iteration_bounds = array<i64: 1>, scalar_prefetch = 0 : i64, scratch_operands = 0 : i64, tpu.core_type = #tpu.core_type<tc>, window_params = [{transform_indices = @transform_0, window_bounds = array<i64: 3>}, {transform_indices = @transform_1, window_bounds = array<i64: 256, 512>}, {pipeline_mode = #tpu.pipeline_mode<synchronous>, transform_indices = @transform_2, window_bounds = array<i64: 512, 128>}, {pipeline_mode = #tpu.pipeline_mode<synchronous>, transform_indices = @transform_3, window_bounds = array<i64: 1, 128>}, {pipeline_mode = #tpu.pipeline_mode<synchronous>, transform_indices = @transform_4, window_bounds = array<i64: 1, 128>}, {transform_indices = @transform_5, window_bounds = array<i64: 1, 256>}, {transform_indices = @transform_6, window_bounds = array<i64: 1, 256>}]} {
    %c0 = arith.constant 0 : index
    %0 = memref.load %arg1[%c0] : memref<3xf32, #tpu.memory_space<smem>>
    %c1 = arith.constant 1 : index
    %1 = memref.load %arg1[%c1] : memref<3xf32, #tpu.memory_space<smem>>
    %c2 = arith.constant 2 : index
    %2 = memref.load %arg1[%c2] : memref<3xf32, #tpu.memory_space<smem>>
    %c0_0 = arith.constant 0 : index
    %c0_1 = arith.constant 0 : index
    %3 = vector.load %arg2[%c0_0, %c0_1] : memref<256x512xf32, #tpu.memory_space<vmem>>, vector<256x512xf32>
    %4 = arith.truncf %3 : vector<256x512xf32> to vector<256x512xbf16>
    %c0_2 = arith.constant 0 : index
    %c0_3 = arith.constant 0 : index
    %5 = vector.load %arg3[%c0_2, %c0_3] : memref<512x128xbf16, #tpu.memory_space<vmem>>, vector<512x128xbf16>
    %cst = arith.constant dense<0.000000e+00> : vector<256x128xf32>
    %6 = tpu.matmul %4, %5, %cst {dimension_numbers = #tpu.dot_dimension_numbers<[1], [0], [0], [1], [0, 0, 1, 1], [], []>} : vector<256x512xbf16>, vector<512x128xbf16>, vector<256x128xf32> -> vector<256x128xf32>
    %c0_4 = arith.constant 0 : index
    %c0_5 = arith.constant 0 : index
    %7 = vector.load %arg4[%c0_4, %c0_5] : memref<1x128xf32, #tpu.memory_space<vmem>>, vector<1x128xf32>
    %8 = vector.broadcast %7 : vector<1x128xf32> to vector<256x128xf32>
    %9 = arith.addf %6, %8 : vector<256x128xf32>
    %cst_6 = arith.constant 0.000000e+00 : f32
    %10 = vector.broadcast %cst_6 : f32 to vector<256x128xf32>
    %11 = arith.maximumf %9, %10 : vector<256x128xf32>
    %c0_7 = arith.constant 0 : index
    %c0_8 = arith.constant 0 : index
    %12 = vector.load %arg5[%c0_7, %c0_8] : memref<1x128xf32, #tpu.memory_space<vmem>>, vector<1x128xf32>
    %cst_9 = arith.constant dense<0.000000e+00> : vector<1x256xf32>
    %13 = tpu.matmul %12, %11, %cst_9 {dimension_numbers = #tpu.dot_dimension_numbers<[1], [1], [0], [0], [0, 0, 1, 0], [], []>} : vector<1x128xf32>, vector<256x128xf32>, vector<1x256xf32> -> vector<1x256xf32>
    %14 = vector.broadcast %2 : f32 to vector<1x256xf32>
    %15 = arith.addf %13, %14 : vector<1x256xf32>
    %16 = arith.negf %15 : vector<1x256xf32>
    %17 = math.exp %16 : vector<1x256xf32>
    %cst_10 = arith.constant 1.000000e+00 : f32
    %18 = vector.broadcast %cst_10 : f32 to vector<1x256xf32>
    %19 = arith.addf %18, %17 : vector<1x256xf32>
    %20 = arith.divf %18, %19 : vector<1x256xf32>
    %c0_11 = arith.constant 0 : index
    %c0_12 = arith.constant 0 : index
    %21 = vector.load %arg6[%c0_11, %c0_12] : memref<1x256xf32, #tpu.memory_space<vmem>>, vector<1x256xf32>
    %22 = vector.broadcast %0 : f32 to vector<1x256xf32>
    %23 = arith.subf %21, %22 : vector<1x256xf32>
    %24 = vector.broadcast %1 : f32 to vector<1x256xf32>
    %25 = arith.mulf %23, %24 : vector<1x256xf32>
    %26 = arith.addf %25, %20 : vector<1x256xf32>
    %27 = arith.negf %26 : vector<1x256xf32>
    %28 = math.exp %27 : vector<1x256xf32>
    %cst_13 = arith.constant 1.000000e+00 : f32
    %29 = vector.broadcast %cst_13 : f32 to vector<1x256xf32>
    %30 = arith.addf %29, %28 : vector<1x256xf32>
    %31 = arith.divf %29, %30 : vector<1x256xf32>
    %c0_14 = arith.constant 0 : index
    %c0_15 = arith.constant 0 : index
    %32 = vector.load %arg7[%c0_14, %c0_15] : memref<1x256xf32, #tpu.memory_space<vmem>>, vector<1x256xf32>
    tpu.vector_store %arg7[%c0_14, %c0_15], %31 {strides = array<i32>} : memref<1x256xf32, #tpu.memory_space<vmem>>, vector<1x256xf32>,
    return
  }
  func.func @transform_0(%arg0: i32) -> i32 {
    %c0_i32 = arith.constant 0 : i32
    %c0_i32_0 = arith.constant 0 : i32
    return %c0_i32 : i32
  }
  func.func @transform_1(%arg0: i32) -> (i32, i32) {
    %c0_i32 = arith.constant 0 : i32
    %c0_i32_0 = arith.constant 0 : i32
    return %arg0, %c0_i32 : i32, i32
  }
  func.func @transform_2(%arg0: i32) -> (i32, i32) {
    %c0_i32 = arith.constant 0 : i32
    %c0_i32_0 = arith.constant 0 : i32
    %c0_i32_1 = arith.constant 0 : i32
    return %c0_i32, %c0_i32_0 : i32, i32
  }
  func.func @transform_3(%arg0: i32) -> (i32, i32) {
    %c0_i32 = arith.constant 0 : i32
    %c0_i32_0 = arith.constant 0 : i32
    %c0_i32_1 = arith.constant 0 : i32
    return %c0_i32, %c0_i32_0 : i32, i32
  }
  func.func @transform_4(%arg0: i32) -> (i32, i32) {
    %c0_i32 = arith.constant 0 : i32
    %c0_i32_0 = arith.constant 0 : i32
    %c0_i32_1 = arith.constant 0 : i32
    return %c0_i32, %c0_i32_0 : i32, i32
  }
  func.func @transform_5(%arg0: i32) -> (i32, i32) {
    %c0_i32 = arith.constant 0 : i32
    %c0_i32_0 = arith.constant 0 : i32
    return %c0_i32, %arg0 : i32, i32
  }
  func.func @transform_6(%arg0: i32) -> (i32, i32) {
    %c0_i32 = arith.constant 0 : i32
    %c0_i32_0 = arith.constant 0 : i32
    return %c0_i32, %arg0 : i32, i32
  }
}

</mosaic_0001>

<bundles_post_ra>
// kernel: tpu_custom_call.1
= control target key start
LH: loop header
LB: loop body
LE: loop exit
PB: predicated region body
PF: predicated region fallthrough
CT: control target
= control target key end

     0   :  { %11 = vsyncpa [#allocation5], 0  ;;  %s1631_s0 = inlined_call_operand.hbm [shape: f32[3], index: 0, kind: input, shape index: {}]   ;;  %s1632_s1 = inlined_call_operand.hbm [shape: f32[256,512], index: 1, kind: input, shape index: {}]   ;;  %s1633_s2 = inlined_call_operand.hbm [shape: bf16[512,128], index: 2, kind: input, shape index: {}]   ;;  %s1634_s3 = inlined_call_operand.vmem [shape: f32[1,128], index: 3, kind: input, shape index: {}]   ;;  %s1635_s4 = inlined_call_operand.vmem [shape: f32[1,128], index: 4, kind: input, shape index: {}]   ;;  %s1636_s5 = inlined_call_operand.vmem [shape: f32[1,256], index: 5, kind: input, shape index: {}]   ;;  %s1637_s6 = inlined_call_operand.hbm [shape: f32[1,256], index: 6, kind: output, shape index: {}]  }
   0x1   :  { %12 = vsyncpa [#allocation3], 0 }
   0x2   :  { %13 = vsyncpa [#allocation8], 0 }
   0x3   :  { %14 = vsyncpa [#allocation4], 0  ;;  %s1438_s21 = smov [#allocation2]   ;;  %s1439_s24 = smov [#allocation6]  }
   0x4   :  { %22 = dma.hbm_to_smem %s1631_s0, 16, %s1438_s21, [#allocation5]  }
   0x5   :  { %s28_s25 = sshll.u32 %s1439_s24, 4  ;;  %s29_s25 = int_to_ptr.vmem [resolvable:$true] %s28_s25 }
   0x6   :  { %s1378_s26 = scalar_lea.vmem %s29_s25, 16384  ;;  %p1383_p1 = scmp.lt.s32.totalorder %s29_s25, %s29_s25 }
   0x7   :  { %p1379_p0 = scmp.ne.s32.totalorder %s29_s25, %s1378_s26  ;;  %p1384_p2 = scmp.lt.s32.totalorder %s1378_s26, %s1378_s26 }
   0x9   :  { %p1385_p3 = por %p1384_p2, %p1383_p1 }
   0xb   :  { %p1386_p4 = pnand %p1385_p3, %p1379_p0 }
   0xd   :  { %1389 = shalt.err (!%p1386_p4)
}
   0xe   :  { %s1440_s27 = smov 512   ;;  %s1441_s28 = smov 32  }
   0xf   :  { %34 = dma.hbm_to_vmem [thread:$0]  %s1632_s1, 16384, %s29_s25, [#allocation3], %s1440_s27, %s1440_s27, %s1441_s28  }
  0x10   :  { %s1442_s7 = smov [#allocation7]  }
  0x11   :  { %s40_s8 = sshll.u32 %s1442_s7, 4  ;;  %s41_s8 = int_to_ptr.vmem [resolvable:$true] %s40_s8 }
  0x12   :  { %s1398_s0 = scalar_lea.vmem %s41_s8, 4096  ;;  %p1403_p6 = scmp.lt.s32.totalorder %s41_s8, %s41_s8 }
  0x13   :  { %p1399_p5 = scmp.ne.s32.totalorder %s41_s8, %s1398_s0  ;;  %p1404_p7 = scmp.lt.s32.totalorder %s1398_s0, %s1398_s0 }
  0x15   :  { %p1405_p8 = por %p1404_p7, %p1403_p6 }
  0x17   :  { %p1406_p9 = pnand %p1405_p8, %p1399_p5 }
  0x19   :  { %1409 = shalt.err (!%p1406_p9)
}
  0x1a   :  { %s1443_s9 = smov 64   ;;  %s1444_s10 = smov 4  }
  0x1b   :  { %46 = dma.hbm_to_vmem [thread:$0]  %s1633_s2, 4096, %s41_s8, [#allocation8], %s1443_s9, %s1443_s9, %s1444_s10  }
  0x1c   :  { %1430 = dma.done.wait [#allocation5], 16  }
  0x1d   :  { %1431 = vsyncadd [#allocation5], 4294967280 }
  0x1e   :  { %1432 = dma.done.wait [#allocation3], 16384  }
  0x1f   :  { %1433 = vsyncadd [#allocation3], 4294950912 }
  0x20   :  { %1434 = dma.done.wait [#allocation8], 4096  }
  0x21   :  { %1435 = vsyncadd [#allocation8], 4294963200 }
  0x22   :  { %62 = sfence }
  0x23   :  { %v1318_v0 = vld [vmem:[#allocation7 + $0x78] sm:$0xff]   ;;  %v1322_v4 = vld [vmem:[#allocation7 + $0x70] sm:$0xff]   ;;  %v1326_v8 = vld [vmem:[#allocation7 + $0x68] sm:$0xff]   ;;  %s64_s14 = sld [smem:[#allocation2]]  ;;  %s1446_s18 = smov [#allocation9]  }
  0x24   :  { %v1319_v1 = vld [vmem:[#allocation7 + $0xf8] sm:$0xff]   ;;  %1051 = vmatprep.subr.bf16.mxu0 %v1318_v0  ;;  %v1323_v5 = vld [vmem:[#allocation7 + $0xf0] sm:$0xff]   ;;  %v1327_v9 = vld [vmem:[#allocation7 + $0xe8] sm:$0xff]   ;;  %s1013_s15 = sld [smem:[#allocation2 + $0x1]]  ;;  %s1002_s19 = sshll.u32 %s1446_s18, 4  ;;  %s1003_s19 = int_to_ptr.vmem [resolvable:$true] %s1002_s19 }
  0x25   :  { %v1320_v2 = vld [vmem:[#allocation7 + $0x38] sm:$0xff]   ;;  %1163 = vmatprep.subr.bf16.mxu1 %v1319_v1  ;;  %v1324_v6 = vld [vmem:[#allocation7 + $0x30] sm:$0xff]   ;;  %v1328_v10 = vld [vmem:[#allocation7 + $0x28] sm:$0xff]   ;;  %p1415_p11 = scmp.lt.s32.totalorder %s1003_s19, %s1003_s19 }
  0x26   :  { %v1321_v3 = vld [vmem:[#allocation7 + $0xb8] sm:$0xff]   ;;  %1052 = vmatpush3.bf16.msra.mxu0 %v1320_v2  ;;  %v1325_v7 = vld [vmem:[#allocation7 + $0xb0] sm:$0xff]   ;;  %v1329_v11 = vld [vmem:[#allocation7 + $0xa8] sm:$0xff]  }
  0x27   :  { %1164 = vmatpush3.bf16.msra.mxu1 %v1321_v3  ;;  %1053 = vmatprep.subr.bf16.mxu0 %v1322_v4  ;;  %v1330_v12 = vld [vmem:[#allocation7 + $0x60] sm:$0xff]   ;;  %v1334_v16 = vld [vmem:[#allocation7 + $0x58] sm:$0xff]   ;;  %v1338_v20 = vld [vmem:[#allocation7 + $0x50] sm:$0xff]  }
  0x28   :  { %1165 = vmatprep.subr.bf16.mxu1 %v1323_v5  ;;  %v1331_v13 = vld [vmem:[#allocation7 + $0xe0] sm:$0xff]   ;;  %v1335_v17 = vld [vmem:[#allocation7 + $0xd8] sm:$0xff]   ;;  %v1339_v21 = vld [vmem:[#allocation7 + $0xd0] sm:$0xff]  }
  0x29   :  { %v1332_v14 = vld [vmem:[#allocation7 + $0x20] sm:$0xff]   ;;  %v1336_v18 = vld [vmem:[#allocation7 + $0x18] sm:$0xff]   ;;  %v1340_v22 = vld [vmem:[#allocation7 + $0x10] sm:$0xff]  }
  0x2a   :  { %1054 = vmatpush3.bf16.msra.mxu0 %v1324_v6  ;;  %v1333_v15 = vld [vmem:[#allocation7 + $0xa0] sm:$0xff]   ;;  %v1337_v19 = vld [vmem:[#allocation7 + $0x98] sm:$0xff]   ;;  %v1341_v23 = vld [vmem:[#allocation7 + $0x90] sm:$0xff]  }
  0x2b   :  { %1166 = vmatpush3.bf16.msra.mxu1 %v1325_v7  ;;  %1055 = vmatprep.subr.bf16.mxu0 %v1326_v8  ;;  %v1342_v24 = vld [vmem:[#allocation7 + $0x48] sm:$0xff]   ;;  %v1346_v28 = vld [vmem:[#allocation7 + $0x40] sm:$0xff]   ;;  %v70_v34 = vld [vmem:[#allocation6 + $0x18] sm:$0xff] }
  0x2c   :  { %1167 = vmatprep.subr.bf16.mxu1 %v1327_v9  ;;  %v1343_v25 = vld [vmem:[#allocation7 + $0xc8] sm:$0xff]   ;;  %v1347_v29 = vld [vmem:[#allocation7 + $0xc0] sm:$0xff]   ;;  %v74_v36 = vld [vmem:[#allocation6 + $0x38] sm:$0xff] }
  0x2d   :  { %v1344_v26 = vld [vmem:[#allocation7 + $0x8] sm:$0xff]   ;;  %v1348_v30 = vld [vmem:[#allocation7] sm:$0xff]   ;;  %v198_v39 = vpack.c.bf16 %v74_v36, %v70_v34  ;;  %v69_v41 = vld [vmem:[#allocation6 + $0x10] sm:$0xff] }
  0x2e   :  { %1056 = vmatpush3.bf16.msra.mxu0 %v1328_v10  ;;  %v1345_v27 = vld [vmem:[#allocation7 + $0x88] sm:$0xff]   ;;  %v1349_v31 = vld [vmem:[#allocation7 + $0x80] sm:$0xff]   ;;  %v73_v42 = vld [vmem:[#allocation6 + $0x30] sm:$0xff] }
  0x2f   :  { %1168 = vmatpush3.bf16.msra.mxu1 %v1329_v11  ;;  %1057 = vmatprep.subr.bf16.mxu0 %v1330_v12  ;;  %v68_v32 = vld [vmem:[#allocation6 + $0x8] sm:$0xff]  ;;  %v67_v37 = vld [vmem:[#allocation6] sm:$0xff]  ;;  %v197_v44 = vpack.c.bf16 %v73_v42, %v69_v41  ;;  %v78_v46 = vld [vmem:[#allocation6 + $0x58] sm:$0xff] }
  0x30   :  { %1169 = vmatprep.subr.bf16.mxu1 %v1331_v13  ;;  %v72_v33 = vld [vmem:[#allocation6 + $0x28] sm:$0xff]  ;;  %v71_v38 = vld [vmem:[#allocation6 + $0x20] sm:$0xff]  ;;  %v82_v47 = vld [vmem:[#allocation6 + $0x78] sm:$0xff]  ;;  %715 = vmatprep.mubr.bf16.mxu1 %v198_v39 }
  0x31   :  { %v196_v35 = vpack.c.bf16 %v72_v33, %v68_v32  ;;  %v195_v40 = vpack.c.bf16 %v71_v38, %v67_v37  ;;  %v76_v43 = vld [vmem:[#allocation6 + $0x48] sm:$0xff]  ;;  %v202_v49 = vpack.c.bf16 %v82_v47, %v78_v46  ;;  %v75_v50 = vld [vmem:[#allocation6 + $0x40] sm:$0xff]  ;;  %v77_v52 = vld [vmem:[#allocation6 + $0x50] sm:$0xff] }
  0x32   :  { %1058 = vmatpush3.bf16.msra.mxu0 %v1332_v14  ;;  %v80_v45 = vld [vmem:[#allocation6 + $0x68] sm:$0xff]  ;;  %v79_v51 = vld [vmem:[#allocation6 + $0x60] sm:$0xff]  ;;  %v81_v53 = vld [vmem:[#allocation6 + $0x70] sm:$0xff] }
  0x33   :  { %1170 = vmatpush3.bf16.msra.mxu1 %v1333_v15  ;;  %1059 = vmatprep.subr.bf16.mxu0 %v1334_v16  ;;  %v200_v48 = vpack.c.bf16 %v80_v45, %v76_v43  ;;  %v84_v54 = vld [vmem:[#allocation6 + $0x88] sm:$0xff]  ;;  %v86_v56 = vld [vmem:[#allocation6 + $0x98] sm:$0xff]  ;;  %v199_v58 = vpack.c.bf16 %v79_v51, %v75_v50  ;;  %v201_v59 = vpack.c.bf16 %v81_v53, %v77_v52  ;;  %v83_v62 = vld [vmem:[#allocation6 + $0x80] sm:$0xff] }
  0x34   :  { %1171 = vmatprep.subr.bf16.mxu1 %v1335_v17  ;;  %554 = vmatprep.mubr.bf16.mxu0 %v196_v35  ;;  %v88_v55 = vld [vmem:[#allocation6 + $0xa8] sm:$0xff]  ;;  %v90_v57 = vld [vmem:[#allocation6 + $0xb8] sm:$0xff]  ;;  %v87_v63 = vld [vmem:[#allocation6 + $0xa0] sm:$0xff] }
  0x35   :  { %v204_v60 = vpack.c.bf16 %v88_v55, %v84_v54  ;;  %v206_v61 = vpack.c.bf16 %v90_v57, %v86_v56  ;;  %v85_v0 = vld [vmem:[#allocation6 + $0x90] sm:$0xff]  ;;  %v92_v2 = vld [vmem:[#allocation6 + $0xc8] sm:$0xff]  ;;  %v94_v4 = vld [vmem:[#allocation6 + $0xd8] sm:$0xff]  ;;  %v203_v6 = vpack.c.bf16 %v87_v63, %v83_v62 }
  0x36   :  { %1060 = vmatpush3.bf16.msra.mxu0 %v1336_v18  ;;  %v89_v1 = vld [vmem:[#allocation6 + $0xb0] sm:$0xff]  ;;  %v96_v3 = vld [vmem:[#allocation6 + $0xe8] sm:$0xff]  ;;  %v98_v5 = vld [vmem:[#allocation6 + $0xf8] sm:$0xff] }
  0x37   :  { %1172 = vmatpush3.bf16.msra.mxu1 %v1337_v19  ;;  %1061 = vmatprep.subr.bf16.mxu0 %v1338_v20  ;;  %v205_v7 = vpack.c.bf16 %v89_v1, %v85_v0  ;;  %v208_v8 = vpack.c.bf16 %v96_v3, %v92_v2  ;;  %v210_v9 = vpack.c.bf16 %v98_v5, %v94_v4  ;;  %v91_v10 = vld [vmem:[#allocation6 + $0xc0] sm:$0xff]  ;;  %v93_v12 = vld [vmem:[#allocation6 + $0xd0] sm:$0xff]  ;;  %v100_v14 = vld [vmem:[#allocation6 + $0x108] sm:$0xff] }
  0x38   :  { %1173 = vmatprep.subr.bf16.mxu1 %v1339_v21  ;;  %v95_v11 = vld [vmem:[#allocation6 + $0xe0] sm:$0xff]  ;;  %v97_v13 = vld [vmem:[#allocation6 + $0xf0] sm:$0xff]  ;;  %v104_v15 = vld [vmem:[#allocation6 + $0x128] sm:$0xff] }
  0x39   :  { %v102_v16 = vld [vmem:[#allocation6 + $0x118] sm:$0xff]  ;;  %v207_v18 = vpack.c.bf16 %v95_v11, %v91_v10  ;;  %v209_v19 = vpack.c.bf16 %v97_v13, %v93_v12  ;;  %v212_v20 = vpack.c.bf16 %v104_v15, %v100_v14  ;;  %v107_v34 = vld [vmem:[#allocation6 + $0x140] sm:$0xff]  ;;  %v109_v36 = vld [vmem:[#allocation6 + $0x150] sm:$0xff] }
  0x3a   :  { %1062 = vmatpush3.bf16.msra.mxu0 %v1340_v22  ;;  %v106_v17 = vld [vmem:[#allocation6 + $0x138] sm:$0xff]  ;;  %v99_v22 = vld [vmem:[#allocation6 + $0x100] sm:$0xff]  ;;  %v113_v37 = vld [vmem:[#allocation6 + $0x170] sm:$0xff] }
  0x3b   :  { %1174 = vmatpush3.bf16.msra.mxu1 %v1341_v23  ;;  %1063 = vmatprep.subr.bf16.mxu0 %v1342_v24  ;;  %v214_v21 = vpack.c.bf16 %v106_v17, %v102_v16  ;;  %v103_v23 = vld [vmem:[#allocation6 + $0x120] sm:$0xff]  ;;  %v101_v24 = vld [vmem:[#allocation6 + $0x110] sm:$0xff]  ;;  %v116_v38 = vld [vmem:[#allocation6 + $0x188] sm:$0xff]  ;;  %v217_v43 = vpack.c.bf16 %v113_v37, %v109_v36 }
  0x3c   :  { %1175 = vmatprep.subr.bf16.mxu1 %v1343_v25  ;;  %v105_v25 = vld [vmem:[#allocation6 + $0x130] sm:$0xff]  ;;  %v111_v35 = vld [vmem:[#allocation6 + $0x160] sm:$0xff]  ;;  %v120_v39 = vld [vmem:[#allocation6 + $0x1a8] sm:$0xff] }
  0x3d   :  { %v122_v41 = vld [vmem:[#allocation6 + $0x1b8] sm:$0xff]  ;;  %v215_v42 = vpack.c.bf16 %v111_v35, %v107_v34  ;;  %v115_v46 = vld [vmem:[#allocation6 + $0x180] sm:$0xff]  ;;  %v124_v50 = vld [vmem:[#allocation6 + $0x1c8] sm:$0xff] }
  0x3e   :  { %1064 = vmatpush3.bf16.msra.mxu0 %v1344_v26  ;;  %v108_v26 = vld [vmem:[#allocation6 + $0x148] sm:$0xff]  ;;  %v119_v47 = vld [vmem:[#allocation6 + $0x1a0] sm:$0xff]  ;;  %v126_v52 = vld [vmem:[#allocation6 + $0x1d8] sm:$0xff] }
  0x3f   :  { %1176 = vmatpush3.bf16.msra.mxu1 %v1345_v27  ;;  %1065 = vmatprep.subr.bf16.mxu0 %v1346_v28  ;;  %v112_v27 = vld [vmem:[#allocation6 + $0x168] sm:$0xff]  ;;  %v110_v28 = vld [vmem:[#allocation6 + $0x158] sm:$0xff]  ;;  %v219_v54 = vpack.c.bf16 %v119_v47, %v115_v46 }
  0x40   :  { %1177 = vmatprep.subr.bf16.mxu1 %v1347_v29  ;;  %v114_v29 = vld [vmem:[#allocation6 + $0x178] sm:$0xff]  ;;  %v216_v32 = vpack.c.bf16 %v112_v27, %v108_v26  ;;  %v128_v51 = vld [vmem:[#allocation6 + $0x1e8] sm:$0xff] }
  0x41   :  { %v218_v33 = vpack.c.bf16 %v114_v29, %v110_v28  ;;  %v130_v53 = vld [vmem:[#allocation6 + $0x1f8] sm:$0xff]  ;;  %v224_v56 = vpack.c.bf16 %v128_v51, %v124_v50  ;;  %v132_v62 = vld [vmem:[#allocation6 + $0x208] sm:$0xff] }
  0x42   :  { %1066 = vmatpush3.bf16.msra.mxu0 %v1348_v30  ;;  %v211_v30 = vpack.c.bf16 %v103_v23, %v99_v22  ;;  %v226_v57 = vpack.c.bf16 %v130_v53, %v126_v52  ;;  %v136_v63 = vld [vmem:[#allocation6 + $0x228] sm:$0xff]  ;;  %v134_v0 = vld [vmem:[#allocation6 + $0x218] sm:$0xff] }
  0x43   :  { %1178 = vmatpush3.bf16.msra.mxu1 %v1349_v31  ;;  %v213_v31 = vpack.c.bf16 %v105_v25, %v101_v24  ;;  %v138_v1 = vld [vmem:[#allocation6 + $0x238] sm:$0xff]  ;;  %v228_v4 = vpack.c.bf16 %v136_v63, %v132_v62  ;;  %v140_v10 = vld [vmem:[#allocation6 + $0x248] sm:$0xff] }
  0x44   :  { %v230_v5 = vpack.c.bf16 %v138_v1, %v134_v0  ;;  %v144_v11 = vld [vmem:[#allocation6 + $0x268] sm:$0xff]  ;;  %v142_v12 = vld [vmem:[#allocation6 + $0x258] sm:$0xff] }
  0x45   :  { %555 = vmatmul.mubr.bf16.vlgmr.msra.gmra.mxu0 %v195_v40  ;;  %v118_v40 = vld [vmem:[#allocation6 + $0x198] sm:$0xff]  ;;  %v232_v16 = vpack.c.bf16 %v144_v11, %v140_v10  ;;  %v148_v22 = vld [vmem:[#allocation6 + $0x288] sm:$0xff] }
  0x46   :  { %716 = vmatmul.mubr.bf16.vlgmr.msra.gmra.mxu1 %v197_v44  ;;  %562 = vmatprep.mubr.bf16.mxu0 %v200_v48  ;;  %v220_v44 = vpack.c.bf16 %v120_v39, %v116_v38  ;;  %v222_v45 = vpack.c.bf16 %v122_v41, %v118_v40  ;;  %v117_v48 = vld [vmem:[#allocation6 + $0x190] sm:$0xff]  ;;  %v146_v13 = vld [vmem:[#allocation6 + $0x278] sm:$0xff]  ;;  %v152_v23 = vld [vmem:[#allocation6 + $0x2a8] sm:$0xff] }
  0x47   :  { %723 = vmatprep.mubr.bf16.mxu1 %v202_v49  ;;  %v121_v49 = vld [vmem:[#allocation6 + $0x1b0] sm:$0xff]  ;;  %v234_v17 = vpack.c.bf16 %v146_v13, %v142_v12  ;;  %v150_v24 = vld [vmem:[#allocation6 + $0x298] sm:$0xff]  ;;  %v236_v28 = vpack.c.bf16 %v152_v23, %v148_v22  ;;  %v156_v34 = vld [vmem:[#allocation6 + $0x2c8] sm:$0xff] }
  0x48   :  { %v221_v55 = vpack.c.bf16 %v121_v49, %v117_v48  ;;  %v154_v25 = vld [vmem:[#allocation6 + $0x2b8] sm:$0xff]  ;;  %v160_v35 = vld [vmem:[#allocation6 + $0x2e8] sm:$0xff] }
  0x49   :  { %v238_v29 = vpack.c.bf16 %v154_v25, %v150_v24  ;;  %v158_v36 = vld [vmem:[#allocation6 + $0x2d8] sm:$0xff]  ;;  %v240_v40 = vpack.c.bf16 %v160_v35, %v156_v34  ;;  %v164_v46 = vld [vmem:[#allocation6 + $0x308] sm:$0xff]  ;;  %v1494_v34 = vld [vmem:[%s1634_s3] ss:$0 sm:$0xff] }
  0x4a   :  { %v162_v37 = vld [vmem:[#allocation6 + $0x2f8] sm:$0xff]  ;;  %v168_v47 = vld [vmem:[#allocation6 + $0x328] sm:$0xff] }
  0x4b   :  { %v242_v41 = vpack.c.bf16 %v162_v37, %v158_v36  ;;  %v166_v48 = vld [vmem:[#allocation6 + $0x318] sm:$0xff]  ;;  %v244_v52 = vpack.c.bf16 %v168_v47, %v164_v46 }
  0x4c   :  { %v170_v49 = vld [vmem:[#allocation6 + $0x338] sm:$0xff] }
  0x4d   :  { %563 = vmatmul.mubr.bf16.gmra.mxu0 %v199_v58  ;;  %v123_v58 = vld [vmem:[#allocation6 + $0x1c0] sm:$0xff]  ;;  %v246_v53 = vpack.c.bf16 %v170_v49, %v166_v48 }
  0x4e   :  { %724 = vmatmul.mubr.bf16.gmra.mxu1 %v201_v59  ;;  %570 = vmatprep.mubr.bf16.mxu0 %v204_v60  ;;  %v127_v59 = vld [vmem:[#allocation6 + $0x1e0] sm:$0xff]  ;;  %v125_v60 = vld [vmem:[#allocation6 + $0x1d0] sm:$0xff] }
  0x4f   :  { %731 = vmatprep.mubr.bf16.mxu1 %v206_v61  ;;  %v129_v61 = vld [vmem:[#allocation6 + $0x1f0] sm:$0xff]  ;;  %v223_v2 = vpack.c.bf16 %v127_v59, %v123_v58  ;;  %v172_v58 = vld [vmem:[#allocation6 + $0x348] sm:$0xff] }
  0x50   :  { %v225_v3 = vpack.c.bf16 %v129_v61, %v125_v60  ;;  %v176_v59 = vld [vmem:[#allocation6 + $0x368] sm:$0xff]  ;;  %v174_v60 = vld [vmem:[#allocation6 + $0x358] sm:$0xff] }
  0x51   :  { %v178_v61 = vld [vmem:[#allocation6 + $0x378] sm:$0xff]  ;;  %v248_v0 = vpack.c.bf16 %v176_v59, %v172_v58 }
  0x52   :  { %v250_v1 = vpack.c.bf16 %v178_v61, %v174_v60 }
  0x55   :  { %571 = vmatmul.mubr.bf16.gmra.mxu0 %v203_v6  ;;  %v131_v6 = vld [vmem:[#allocation6 + $0x200] sm:$0xff] }
  0x56   :  { %732 = vmatmul.mubr.bf16.gmra.mxu1 %v205_v7  ;;  %578 = vmatprep.mubr.bf16.mxu0 %v208_v8  ;;  %v135_v7 = vld [vmem:[#allocation6 + $0x220] sm:$0xff]  ;;  %v133_v8 = vld [vmem:[#allocation6 + $0x210] sm:$0xff] }
  0x57   :  { %739 = vmatprep.mubr.bf16.mxu1 %v210_v9  ;;  %v137_v9 = vld [vmem:[#allocation6 + $0x230] sm:$0xff]  ;;  %v227_v14 = vpack.c.bf16 %v135_v7, %v131_v6  ;;  %v180_v6 = vld [vmem:[#allocation6 + $0x388] sm:$0xff] }
  0x58   :  { %v229_v15 = vpack.c.bf16 %v137_v9, %v133_v8  ;;  %v184_v7 = vld [vmem:[#allocation6 + $0x3a8] sm:$0xff]  ;;  %v182_v8 = vld [vmem:[#allocation6 + $0x398] sm:$0xff] }
  0x59   :  { %v186_v9 = vld [vmem:[#allocation6 + $0x3b8] sm:$0xff]  ;;  %v252_v12 = vpack.c.bf16 %v184_v7, %v180_v6 }
  0x5a   :  { %v254_v13 = vpack.c.bf16 %v186_v9, %v182_v8 }
  0x5d   :  { %579 = vmatmul.mubr.bf16.gmra.mxu0 %v207_v18  ;;  %v139_v18 = vld [vmem:[#allocation6 + $0x240] sm:$0xff] }
  0x5e   :  { %740 = vmatmul.mubr.bf16.gmra.mxu1 %v209_v19  ;;  %586 = vmatprep.mubr.bf16.mxu0 %v212_v20  ;;  %v143_v19 = vld [vmem:[#allocation6 + $0x260] sm:$0xff]  ;;  %v141_v20 = vld [vmem:[#allocation6 + $0x250] sm:$0xff] }
  0x5f   :  { %747 = vmatprep.mubr.bf16.mxu1 %v214_v21  ;;  %v145_v21 = vld [vmem:[#allocation6 + $0x270] sm:$0xff]  ;;  %v231_v26 = vpack.c.bf16 %v143_v19, %v139_v18  ;;  %v188_v18 = vld [vmem:[#allocation6 + $0x3c8] sm:$0xff] }
  0x60   :  { %v233_v27 = vpack.c.bf16 %v145_v21, %v141_v20  ;;  %v192_v19 = vld [vmem:[#allocation6 + $0x3e8] sm:$0xff]  ;;  %v190_v20 = vld [vmem:[#allocation6 + $0x3d8] sm:$0xff] }
  0x61   :  { %v194_v21 = vld [vmem:[#allocation6 + $0x3f8] sm:$0xff]  ;;  %v256_v24 = vpack.c.bf16 %v192_v19, %v188_v18 }
  0x62   :  { %v258_v25 = vpack.c.bf16 %v194_v21, %v190_v20 }
  0x65   :  { %587 = vmatmul.mubr.bf16.gmra.mxu0 %v211_v30  ;;  %v147_v30 = vld [vmem:[#allocation6 + $0x280] sm:$0xff] }
  0x66   :  { %748 = vmatmul.mubr.bf16.gmra.mxu1 %v213_v31  ;;  %594 = vmatprep.mubr.bf16.mxu0 %v216_v32  ;;  %v151_v31 = vld [vmem:[#allocation6 + $0x2a0] sm:$0xff]  ;;  %v149_v32 = vld [vmem:[#allocation6 + $0x290] sm:$0xff] }
  0x67   :  { %755 = vmatprep.mubr.bf16.mxu1 %v218_v33  ;;  %v153_v33 = vld [vmem:[#allocation6 + $0x2b0] sm:$0xff]  ;;  %v235_v38 = vpack.c.bf16 %v151_v31, %v147_v30 }
  0x68   :  { %v237_v39 = vpack.c.bf16 %v153_v33, %v149_v32 }
  0x6d   :  { %595 = vmatmul.mubr.bf16.gmra.mxu0 %v215_v42  ;;  %v155_v42 = vld [vmem:[#allocation6 + $0x2c0] sm:$0xff] }
  0x6e   :  { %756 = vmatmul.mubr.bf16.gmra.mxu1 %v217_v43  ;;  %602 = vmatprep.mubr.bf16.mxu0 %v220_v44  ;;  %v159_v43 = vld [vmem:[#allocation6 + $0x2e0] sm:$0xff]  ;;  %v157_v44 = vld [vmem:[#allocation6 + $0x2d0] sm:$0xff] }
  0x6f   :  { %763 = vmatprep.mubr.bf16.mxu1 %v222_v45  ;;  %v161_v45 = vld [vmem:[#allocation6 + $0x2f0] sm:$0xff]  ;;  %v239_v50 = vpack.c.bf16 %v159_v43, %v155_v42 }
  0x70   :  { %v241_v51 = vpack.c.bf16 %v161_v45, %v157_v44 }
  0x75   :  { %603 = vmatmul.mubr.bf16.gmra.mxu0 %v219_v54  ;;  %v163_v54 = vld [vmem:[#allocation6 + $0x300] sm:$0xff] }
  0x76   :  { %764 = vmatmul.mubr.bf16.gmra.mxu1 %v221_v55  ;;  %610 = vmatprep.mubr.bf16.mxu0 %v224_v56  ;;  %v167_v55 = vld [vmem:[#allocation6 + $0x320] sm:$0xff]  ;;  %v165_v56 = vld [vmem:[#allocation6 + $0x310] sm:$0xff] }
  0x77   :  { %771 = vmatprep.mubr.bf16.mxu1 %v226_v57  ;;  %v169_v57 = vld [vmem:[#allocation6 + $0x330] sm:$0xff]  ;;  %v243_v62 = vpack.c.bf16 %v167_v55, %v163_v54 }
  0x78   :  { %v245_v63 = vpack.c.bf16 %v169_v57, %v165_v56 }
  0x7d   :  { %611 = vmatmul.mubr.bf16.gmra.mxu0 %v223_v2  ;;  %v171_v2 = vld [vmem:[#allocation6 + $0x340] sm:$0xff] }
  0x7e   :  { %772 = vmatmul.mubr.bf16.gmra.mxu1 %v225_v3  ;;  %618 = vmatprep.mubr.bf16.mxu0 %v228_v4  ;;  %v175_v3 = vld [vmem:[#allocation6 + $0x360] sm:$0xff]  ;;  %v173_v4 = vld [vmem:[#allocation6 + $0x350] sm:$0xff] }
  0x7f   :  { %779 = vmatprep.mubr.bf16.mxu1 %v230_v5  ;;  %v177_v5 = vld [vmem:[#allocation6 + $0x370] sm:$0xff]  ;;  %v247_v10 = vpack.c.bf16 %v175_v3, %v171_v2 }
  0x80   :  { %v249_v11 = vpack.c.bf16 %v177_v5, %v173_v4 }
  0x85   :  { %619 = vmatmul.mubr.bf16.gmra.mxu0 %v227_v14  ;;  %v179_v14 = vld [vmem:[#allocation6 + $0x380] sm:$0xff] }
  0x86   :  { %780 = vmatmul.mubr.bf16.gmra.mxu1 %v229_v15  ;;  %626 = vmatprep.mubr.bf16.mxu0 %v232_v16  ;;  %v183_v15 = vld [vmem:[#allocation6 + $0x3a0] sm:$0xff]  ;;  %v181_v16 = vld [vmem:[#allocation6 + $0x390] sm:$0xff] }
  0x87   :  { %787 = vmatprep.mubr.bf16.mxu1 %v234_v17  ;;  %v185_v17 = vld [vmem:[#allocation6 + $0x3b0] sm:$0xff]  ;;  %v251_v22 = vpack.c.bf16 %v183_v15, %v179_v14 }
  0x88   :  { %v253_v23 = vpack.c.bf16 %v185_v17, %v181_v16 }
  0x8d   :  { %627 = vmatmul.mubr.bf16.gmra.mxu0 %v231_v26  ;;  %v187_v26 = vld [vmem:[#allocation6 + $0x3c0] sm:$0xff] }
  0x8e   :  { %788 = vmatmul.mubr.bf16.gmra.mxu1 %v233_v27  ;;  %634 = vmatprep.mubr.bf16.mxu0 %v236_v28  ;;  %v191_v27 = vld [vmem:[#allocation6 + $0x3e0] sm:$0xff]  ;;  %v189_v28 = vld [vmem:[#allocation6 + $0x3d0] sm:$0xff] }
  0x8f   :  { %795 = vmatprep.mubr.bf16.mxu1 %v238_v29  ;;  %v193_v29 = vld [vmem:[#allocation6 + $0x3f0] sm:$0xff]  ;;  %v255_v30 = vpack.c.bf16 %v191_v27, %v187_v26 }
  0x90   :  { %v257_v31 = vpack.c.bf16 %v193_v29, %v189_v28 }
  0x95   :  { %635 = vmatmul.mubr.bf16.gmra.mxu0 %v235_v38 }
  0x96   :  { %796 = vmatmul.mubr.bf16.gmra.mxu1 %v237_v39  ;;  %642 = vmatprep.mubr.bf16.mxu0 %v240_v40 }
  0x97   :  { %803 = vmatprep.mubr.bf16.mxu1 %v242_v41 }
  0x9d   :  { %643 = vmatmul.mubr.bf16.gmra.mxu0 %v239_v50 }
  0x9e   :  { %804 = vmatmul.mubr.bf16.gmra.mxu1 %v241_v51  ;;  %650 = vmatprep.mubr.bf16.mxu0 %v244_v52 }
  0x9f   :  { %811 = vmatprep.mubr.bf16.mxu1 %v246_v53 }
  0xa5   :  { %651 = vmatmul.mubr.bf16.gmra.mxu0 %v243_v62 }
  0xa6   :  { %812 = vmatmul.mubr.bf16.gmra.mxu1 %v245_v63  ;;  %658 = vmatprep.mubr.bf16.mxu0 %v248_v0 }
  0xa7   :  { %819 = vmatprep.mubr.bf16.mxu1 %v250_v1 }
  0xad   :  { %659 = vmatmul.mubr.bf16.gmra.mxu0 %v247_v10 }
  0xae   :  { %820 = vmatmul.mubr.bf16.gmra.mxu1 %v249_v11  ;;  %666 = vmatprep.mubr.bf16.mxu0 %v252_v12 }
  0xaf   :  { %827 = vmatprep.mubr.bf16.mxu1 %v254_v13 }
  0xb5   :  { %667 = vmatmul.mubr.bf16.gmra.mxu0 %v251_v22 }
  0xb6   :  { %828 = vmatmul.mubr.bf16.gmra.mxu1 %v253_v23  ;;  %674 = vmatprep.mubr.bf16.mxu0 %v256_v24 }
  0xb7   :  { %835 = vmatprep.mubr.bf16.mxu1 %v258_v25 }
  0xbd   :  { %675 = vmatmul.mubr.bf16.gmra.mxu0 %v255_v30 }
  0xbe   :  { %836 = vmatmul.mubr.bf16.gmra.mxu1 %v257_v31 }
 0x105   :  { %v1067_v32 = vpop.f32.mrf.mxu0 }
 0x106   :  { %v1179_v33 = vpop.f32.mrf.mxu1 }
 0x107   :  { %v1068_v35 = vpop.f32.mrf.mxu0 }
 0x108   :  { %v1069_v36 = vadd.f32 %v1068_v35, %v1067_v32  ;;  %v1180_v37 = vpop.f32.mrf.mxu1 }
 0x109   :  { %v1181_v38 = vadd.f32 %v1180_v37, %v1179_v33  ;;  %v1070_v39 = vpop.f32.mrf.mxu0 }
 0x10a   :  { %v557_v40 = vadd.f32 %v1069_v36, %v1494_v34  ;;  %v1182_v41 = vpop.f32.mrf.mxu1 }
 0x10b   :  { %v1071_v42 = vpop.f32.mrf.mxu0 }
 0x10c   :  { %v1497_v43 = vadd.f32 %v1181_v38, %v557_v40  ;;  %v1072_v44 = vadd.f32 %v1071_v42, %v1070_v39  ;;  %v1183_v45 = vpop.f32.mrf.mxu1 }
 0x10d   :  { %v1184_v46 = vadd.f32 %v1183_v45, %v1182_v41  ;;  %v1073_v47 = vpop.f32.mrf.mxu0 }
 0x10e   :  { %1639 = vst [vmem:[#allocation14_spill] sm:$0xff] %v1497_v43  ;;  %v560_v48 = vadd.f32 %v1072_v44, %v1494_v34  ;;  %v1185_v49 = vpop.f32.mrf.mxu1 }
 0x10f   :  { %v1074_v50 = vpop.f32.mrf.mxu0 }
 0x110   :  { %v1500_v51 = vadd.f32 %v1184_v46, %v560_v48  ;;  %v1075_v52 = vadd.f32 %v1074_v50, %v1073_v47  ;;  %v1186_v53 = vpop.f32.mrf.mxu1 }
 0x111   :  { %v1187_v54 = vadd.f32 %v1186_v53, %v1185_v49  ;;  %v1076_v55 = vpop.f32.mrf.mxu0 }
 0x112   :  { %1640 = vst [vmem:[#allocation15_spill] sm:$0xff] %v1500_v51  ;;  %v565_v56 = vadd.f32 %v1075_v52, %v1494_v34  ;;  %v1188_v57 = vpop.f32.mrf.mxu1 }
 0x113   :  { %v1077_v58 = vpop.f32.mrf.mxu0 }
 0x114   :  { %v1503_v59 = vadd.f32 %v1187_v54, %v565_v56  ;;  %v1078_v60 = vadd.f32 %v1077_v58, %v1076_v55  ;;  %v1189_v61 = vpop.f32.mrf.mxu1 }
 0x115   :  { %v1190_v62 = vadd.f32 %v1189_v61, %v1188_v57  ;;  %v1079_v63 = vpop.f32.mrf.mxu0 }
 0x116   :  { %1641 = vst [vmem:[#allocation16_spill] sm:$0xff] %v1503_v59  ;;  %v568_v0 = vadd.f32 %v1078_v60, %v1494_v34  ;;  %v1191_v1 = vpop.f32.mrf.mxu1 }
 0x117   :  { %v1080_v2 = vpop.f32.mrf.mxu0 }
 0x118   :  { %v1506_v3 = vadd.f32 %v1190_v62, %v568_v0  ;;  %v1081_v4 = vadd.f32 %v1080_v2, %v1079_v63  ;;  %v1192_v5 = vpop.f32.mrf.mxu1 }
 0x119   :  { %v1193_v6 = vadd.f32 %v1192_v5, %v1191_v1  ;;  %v1082_v7 = vpop.f32.mrf.mxu0 }
 0x11a   :  { %v573_v8 = vadd.f32 %v1081_v4, %v1494_v34  ;;  %v1194_v9 = vpop.f32.mrf.mxu1 }
 0x11b   :  { %v1083_v10 = vpop.f32.mrf.mxu0 }
 0x11c   :  { %v1509_v11 = vadd.f32 %v1193_v6, %v573_v8  ;;  %v1084_v12 = vadd.f32 %v1083_v10, %v1082_v7  ;;  %v1195_v13 = vpop.f32.mrf.mxu1 }
 0x11d   :  { %v1196_v14 = vadd.f32 %v1195_v13, %v1194_v9  ;;  %v1085_v15 = vpop.f32.mrf.mxu0 }
 0x11e   :  { %v576_v16 = vadd.f32 %v1084_v12, %v1494_v34  ;;  %v1197_v17 = vpop.f32.mrf.mxu1 }
 0x11f   :  { %v1086_v18 = vpop.f32.mrf.mxu0 }
 0x120   :  { %v1512_v19 = vadd.f32 %v1196_v14, %v576_v16  ;;  %v1087_v20 = vadd.f32 %v1086_v18, %v1085_v15  ;;  %v1198_v21 = vpop.f32.mrf.mxu1 }
 0x121   :  { %v1199_v22 = vadd.f32 %v1198_v21, %v1197_v17  ;;  %v1088_v23 = vpop.f32.mrf.mxu0 }
 0x122   :  { %v581_v24 = vadd.f32 %v1087_v20, %v1494_v34  ;;  %v1200_v25 = vpop.f32.mrf.mxu1 }
 0x123   :  { %v1089_v26 = vpop.f32.mrf.mxu0 }
 0x124   :  { %v1515_v27 = vadd.f32 %v1199_v22, %v581_v24  ;;  %v1090_v28 = vadd.f32 %v1089_v26, %v1088_v23  ;;  %v1201_v29 = vpop.f32.mrf.mxu1 }
 0x125   :  { %v1202_v30 = vadd.f32 %v1201_v29, %v1200_v25  ;;  %v1091_v31 = vpop.f32.mrf.mxu0 }
 0x126   :  { %v584_v32 = vadd.f32 %v1090_v28, %v1494_v34  ;;  %v1203_v33 = vpop.f32.mrf.mxu1 }
 0x127   :  { %v1092_v35 = vpop.f32.mrf.mxu0 }
 0x128   :  { %v1518_v36 = vadd.f32 %v1202_v30, %v584_v32  ;;  %v1093_v37 = vadd.f32 %v1092_v35, %v1091_v31  ;;  %v1204_v38 = vpop.f32.mrf.mxu1 }
 0x129   :  { %v1205_v39 = vadd.f32 %v1204_v38, %v1203_v33  ;;  %v1094_v40 = vpop.f32.mrf.mxu0 }
 0x12a   :  { %v589_v41 = vadd.f32 %v1093_v37, %v1494_v34  ;;  %v1206_v42 = vpop.f32.mrf.mxu1 }
 0x12b   :  { %v1095_v44 = vpop.f32.mrf.mxu0 }
 0x12c   :  { %v1521_v45 = vadd.f32 %v1205_v39, %v589_v41  ;;  %v1096_v46 = vadd.f32 %v1095_v44, %v1094_v40  ;;  %v1207_v47 = vpop.f32.mrf.mxu1 }
 0x12d   :  { %v1208_v48 = vadd.f32 %v1207_v47, %v1206_v42  ;;  %v1097_v49 = vpop.f32.mrf.mxu0 }
 0x12e   :  { %v592_v50 = vadd.f32 %v1096_v46, %v1494_v34  ;;  %v1209_v52 = vpop.f32.mrf.mxu1 }
 0x12f   :  { %v1098_v53 = vpop.f32.mrf.mxu0 }
 0x130   :  { %v1524_v54 = vadd.f32 %v1208_v48, %v592_v50  ;;  %v1099_v55 = vadd.f32 %v1098_v53, %v1097_v49  ;;  %v1210_v56 = vpop.f32.mrf.mxu1  ;;  %v1547_v53 = vld [vmem:[%s1635_s4] sm:$0x1]  ;;  %s1014_s4 = sld [smem:[#allocation2 + $0x2]] }
 0x131   :  { %v1211_v57 = vadd.f32 %v1210_v56, %v1209_v52  ;;  %v1100_v58 = vpop.f32.mrf.mxu0  ;;  %1642 = vst [vmem:[#allocation17_spill] sm:$0xff] %v1547_v53  ;;  %1307 = vmatprep.mubr.f32.mxu0 %v1547_v53 }
 0x132   :  { %v597_v60 = vadd.f32 %v1099_v55, %v1494_v34  ;;  %v1212_v61 = vpop.f32.mrf.mxu1 }
 0x133   :  { %v1101_v62 = vpop.f32.mrf.mxu0 }
 0x134   :  { %v1527_v63 = vadd.f32 %v1211_v57, %v597_v60  ;;  %v1102_v0 = vadd.f32 %v1101_v62, %v1100_v58  ;;  %v1213_v1 = vpop.f32.mrf.mxu1 }
 0x135   :  { %v1214_v2 = vadd.f32 %v1213_v1, %v1212_v61  ;;  %v1103_v4 = vpop.f32.mrf.mxu0 }
 0x136   :  { %v600_v5 = vadd.f32 %v1102_v0, %v1494_v34  ;;  %v1215_v6 = vpop.f32.mrf.mxu1 }
 0x137   :  { %v1104_v7 = vpop.f32.mrf.mxu0 }
 0x138   :  { %v1530_v8 = vadd.f32 %v1214_v2, %v600_v5  ;;  %v1105_v9 = vadd.f32 %v1104_v7, %v1103_v4  ;;  %v1216_v10 = vpop.f32.mrf.mxu1 }
 0x139   :  { %v1217_v12 = vadd.f32 %v1216_v10, %v1215_v6  ;;  %v1106_v13 = vpop.f32.mrf.mxu0 }
 0x13a   :  { %v605_v14 = vadd.f32 %v1105_v9, %v1494_v34  ;;  %v1218_v15 = vpop.f32.mrf.mxu1 }
 0x13b   :  { %v1107_v16 = vpop.f32.mrf.mxu0 }
 0x13c   :  { %v1533_v17 = vadd.f32 %v1217_v12, %v605_v14  ;;  %v1108_v18 = vadd.f32 %v1107_v16, %v1106_v13  ;;  %v1219_v20 = vpop.f32.mrf.mxu1 }
 0x13d   :  { %v1220_v21 = vadd.f32 %v1219_v20, %v1218_v15  ;;  %v1109_v22 = vpop.f32.mrf.mxu0 }
 0x13e   :  { %v608_v23 = vadd.f32 %v1108_v18, %v1494_v34  ;;  %v1221_v24 = vpop.f32.mrf.mxu1 }
 0x13f   :  { %v1110_v25 = vpop.f32.mrf.mxu0 }
 0x140   :  { %v1536_v26 = vadd.f32 %v1220_v21, %v608_v23  ;;  %v1111_v28 = vadd.f32 %v1110_v25, %v1109_v22  ;;  %v1222_v29 = vpop.f32.mrf.mxu1 }
 0x141   :  { %v1223_v30 = vadd.f32 %v1222_v29, %v1221_v24  ;;  %v1112_v31 = vpop.f32.mrf.mxu0 }
 0x142   :  { %v613_v32 = vadd.f32 %v1111_v28, %v1494_v34  ;;  %v1224_v33 = vpop.f32.mrf.mxu1 }
 0x143   :  { %v1113_v35 = vpop.f32.mrf.mxu0 }
 0x144   :  { %v1539_v37 = vadd.f32 %v1223_v30, %v613_v32  ;;  %v1114_v38 = vadd.f32 %v1113_v35, %v1112_v31  ;;  %v1225_v39 = vpop.f32.mrf.mxu1 }
 0x145   :  { %v1226_v40 = vadd.f32 %v1225_v39, %v1224_v33  ;;  %v1115_v41 = vpop.f32.mrf.mxu0 }
 0x146   :  { %v616_v42 = vadd.f32 %v1114_v38, %v1494_v34  ;;  %v1227_v44 = vpop.f32.mrf.mxu1 }
 0x147   :  { %v1116_v46 = vpop.f32.mrf.mxu0 }
 0x148   :  { %v1542_v47 = vadd.f32 %v1226_v40, %v616_v42  ;;  %v1117_v48 = vadd.f32 %v1116_v46, %v1115_v41  ;;  %v1228_v49 = vpop.f32.mrf.mxu1 }
 0x149   :  { %v1229_v50 = vadd.f32 %v1228_v49, %v1227_v44  ;;  %v1118_v52 = vpop.f32.mrf.mxu0 }
 0x14a   :  { %v621_v55 = vadd.f32 %v1117_v48, %v1494_v34  ;;  %v1230_v56 = vpop.f32.mrf.mxu1 }
 0x14b   :  { %v1119_v57 = vpop.f32.mrf.mxu0 }
 0x14c   :  { %v1551_v58 = vadd.f32 %v1229_v50, %v621_v55  ;;  %v1120_v60 = vadd.f32 %v1119_v57, %v1118_v52  ;;  %v1231_v61 = vpop.f32.mrf.mxu1 }
 0x14d   :  { %v1232_v62 = vadd.f32 %v1231_v61, %v1230_v56  ;;  %v1121_v0 = vpop.f32.mrf.mxu0 }
 0x14e   :  { %1643 = vst [vmem:[#allocation18_spill] sm:$0xff] %v1551_v58  ;;  %v624_v1 = vadd.f32 %v1120_v60, %v1494_v34  ;;  %v1233_v2 = vpop.f32.mrf.mxu1 }
 0x14f   :  { %v1122_v4 = vpop.f32.mrf.mxu0 }
 0x150   :  { %v1554_v5 = vadd.f32 %v1232_v62, %v624_v1  ;;  %v1123_v6 = vadd.f32 %v1122_v4, %v1121_v0  ;;  %v1234_v7 = vpop.f32.mrf.mxu1 }
 0x151   :  { %v1235_v9 = vadd.f32 %v1234_v7, %v1233_v2  ;;  %v1124_v10 = vpop.f32.mrf.mxu0 }
 0x152   :  { %1644 = vst [vmem:[#allocation19_spill] sm:$0xff] %v1554_v5  ;;  %v629_v12 = vadd.f32 %v1123_v6, %v1494_v34  ;;  %v1236_v13 = vpop.f32.mrf.mxu1 }
 0x153   :  { %v1125_v14 = vpop.f32.mrf.mxu0 }
 0x154   :  { %v1557_v15 = vadd.f32 %v1235_v9, %v629_v12  ;;  %v1126_v16 = vadd.f32 %v1125_v14, %v1124_v10  ;;  %v1237_v18 = vpop.f32.mrf.mxu1 }
 0x155   :  { %v1238_v20 = vadd.f32 %v1237_v18, %v1236_v13  ;;  %v1127_v21 = vpop.f32.mrf.mxu0 }
 0x156   :  { %1645 = vst [vmem:[#allocation20_spill] sm:$0xff] %v1557_v15  ;;  %v632_v22 = vadd.f32 %v1126_v16, %v1494_v34  ;;  %v1239_v23 = vpop.f32.mrf.mxu1 }
 0x157   :  { %v1128_v24 = vpop.f32.mrf.mxu0 }
 0x158   :  { %v1560_v25 = vadd.f32 %v1238_v20, %v632_v22  ;;  %v1129_v28 = vadd.f32 %v1128_v24, %v1127_v21  ;;  %v1240_v29 = vpop.f32.mrf.mxu1 }
 0x159   :  { %v1241_v30 = vadd.f32 %v1240_v29, %v1239_v23  ;;  %v1130_v31 = vpop.f32.mrf.mxu0 }
 0x15a   :  { %v637_v32 = vadd.f32 %v1129_v28, %v1494_v34  ;;  %v1242_v33 = vpop.f32.mrf.mxu1 }
 0x15b   :  { %v1131_v35 = vpop.f32.mrf.mxu0 }
 0x15c   :  { %v1563_v38 = vadd.f32 %v1241_v30, %v637_v32  ;;  %v1132_v39 = vadd.f32 %v1131_v35, %v1130_v31  ;;  %v1243_v40 = vpop.f32.mrf.mxu1 }
 0x15d   :  { %v1244_v41 = vadd.f32 %v1243_v40, %v1242_v33  ;;  %v1133_v42 = vpop.f32.mrf.mxu0 }
 0x15e   :  { %v640_v44 = vadd.f32 %v1132_v39, %v1494_v34  ;;  %v1245_v46 = vpop.f32.mrf.mxu1 }
 0x15f   :  { %v1134_v48 = vpop.f32.mrf.mxu0 }
 0x160   :  { %v1566_v49 = vadd.f32 %v1244_v41, %v640_v44  ;;  %v1135_v50 = vadd.f32 %v1134_v48, %v1133_v42  ;;  %v1246_v52 = vpop.f32.mrf.mxu1 }
 0x161   :  { %v1247_v55 = vadd.f32 %v1246_v52, %v1245_v46  ;;  %v1136_v56 = vpop.f32.mrf.mxu0 }
 0x162   :  { %v645_v57 = vadd.f32 %v1135_v50, %v1494_v34  ;;  %v1248_v60 = vpop.f32.mrf.mxu1 }
 0x163   :  { %v1137_v61 = vpop.f32.mrf.mxu0 }
 0x164   :  { %v1569_v62 = vadd.f32 %v1247_v55, %v645_v57  ;;  %v1138_v0 = vadd.f32 %v1137_v61, %v1136_v56  ;;  %v1249_v1 = vpop.f32.mrf.mxu1 }
 0x165   :  { %v1571_v2 = vpop.f32.mrf.mxu0  ;;  %v1250_v6 = vadd.f32 %v1249_v1, %v1248_v60 }
 0x166   :  { %v648_v4 = vadd.f32 %v1138_v0, %v1494_v34  ;;  %v1574_v7 = vpop.f32.mrf.mxu1 }
 0x167   :  { %v1576_v9 = vpop.f32.mrf.mxu0 }
 0x168   :  { %v1578_v10 = vadd.f32 %v1250_v6, %v648_v4  ;;  %v1580_v12 = vpop.f32.mrf.mxu1 }
 0x169   :  { %v1142_v13 = vpop.f32.mrf.mxu0 }
 0x16a   :  { %v1582_v14 = vpop.f32.mrf.mxu1 }
 0x16b   :  { %v1143_v16 = vpop.f32.mrf.mxu0 }
 0x16c   :  { %v1584_v18 = vpop.f32.mrf.mxu1 }
 0x16d   :  { %v1145_v20 = vpop.f32.mrf.mxu0 }
 0x16e   :  { %v1257_v21 = vpop.f32.mrf.mxu1 }
 0x16f   :  { %v1146_v22 = vpop.f32.mrf.mxu0 }
 0x170   :  { %v1258_v23 = vpop.f32.mrf.mxu1 }
 0x171   :  { %v1148_v24 = vpop.f32.mrf.mxu0 }
 0x172   :  { %v1260_v28 = vpop.f32.mrf.mxu1 }
 0x173   :  { %v1149_v29 = vpop.f32.mrf.mxu0 }
 0x174   :  { %v1261_v30 = vpop.f32.mrf.mxu1  ;;  %v1150_v15 = vadd.f32 %v1149_v29, %v1148_v24  ;;  %v1144_v24 = vadd.f32 %v1143_v16, %v1142_v13  ;;  %v855_v13 = vmax.f32 %v1530_v8, 0.0  ;;  %v867_v8 = vmax.f32 %v1578_v10, 0.0 }
 0x175   :  { %v1151_v31 = vpop.f32.mrf.mxu0  ;;  %v848_v10 = vmax.f32 %v1509_v11, 0.0 }
 0x176   :  { %v1263_v32 = vpop.f32.mrf.mxu1 }
 0x177   :  { %v1152_v33 = vpop.f32.mrf.mxu0 }
 0x178   :  { %v1264_v35 = vpop.f32.mrf.mxu1  ;;  %v1153_v43 = vadd.f32 %v1152_v33, %v1151_v31  ;;  %v1147_v31 = vadd.f32 %v1146_v22, %v1145_v20  ;;  %v664_v33 = vadd.f32 %v1150_v15, %v1494_v34  ;;  %v1141_v15 = vadd.f32 %v1576_v9, %v1571_v2 }
 0x179   :  { %v1154_v39 = vpop.f32.mrf.mxu0  ;;  %v656_v20 = vadd.f32 %v1144_v24, %v1494_v34  ;;  %v854_v2 = vmax.f32 %v1527_v63, 0.0  ;;  %v850_v63 = vmax.f32 %v1515_v27, 0.0 }
 0x17a   :  { %v1266_v40 = vpop.f32.mrf.mxu1  ;;  %v653_v16 = vadd.f32 %v1141_v15, %v1494_v34 }
 0x17b   :  { %v1155_v41 = vpop.f32.mrf.mxu0 }
 0x17c   :  { %v1267_v42 = vpop.f32.mrf.mxu1  ;;  %v1156_v60 = vadd.f32 %v1155_v41, %v1154_v39  ;;  %v669_v39 = vadd.f32 %v1153_v43, %v1494_v34  ;;  %v661_v43 = vadd.f32 %v1147_v31, %v1494_v34  ;;  %v972_v31 = vlaneseq }
 0x17d   :  { %v1157_v44 = vpop.f32.mrf.mxu0  ;;  %v1268_v59 = vadd.f32 %v1267_v42, %v1266_v40  ;;  %v1648_v40 = vld [vmem:[#allocation19_spill] sm:$0xff] }
 0x17e   :  { %v1269_v46 = vpop.f32.mrf.mxu1  ;;  %v672_v58 = vadd.f32 %v1156_v60, %v1494_v34  ;;  %v877_v60 = vstv %s1014_s4  ;;  %vm993_vm0 = vcmp.lt.s32.totalorder %v972_v31, 256 }
 0x17f   :  { %v1158_v48 = vpop.f32.mrf.mxu0 }
 0x180   :  { %v1159_v50 = vadd.f32 %v1158_v48, %v1157_v44  ;;  %v1270_v52 = vpop.f32.mrf.mxu1  ;;  %v859_v48 = vmax.f32 %v1542_v47, 0.0  ;;  %v833_v41 = vadd.f32 %v1268_v59, %v672_v58  ;;  %v857_v47 = vmax.f32 %v1536_v26, 0.0 }
 0x181   :  { %v1160_v55 = vpop.f32.mrf.mxu0  ;;  %v1271_v4 = vadd.f32 %v1270_v52, %v1269_v46  ;;  %v1265_v46 = vadd.f32 %v1264_v35, %v1263_v32  ;;  %v858_v52 = vmax.f32 %v1539_v37, 0.0  ;;  %v1259_v58 = vadd.f32 %v1258_v23, %v1257_v21  ;;  %v1646_v32 = vld [vmem:[#allocation20_spill] sm:$0xff] }
 0x182   :  { %v1272_v56 = vpop.f32.mrf.mxu1  ;;  %v677_v61 = vadd.f32 %v1159_v50, %v1494_v34  ;;  %v856_v37 = vmax.f32 %v1533_v17, 0.0  ;;  %v1256_v26 = vadd.f32 %v1584_v18, %v1582_v14  ;;  %v1253_v17 = vadd.f32 %v1580_v12, %v1574_v7 }
 0x183   :  { %v1161_v57 = vpop.f32.mrf.mxu0  ;;  %v822_v22 = vadd.f32 %v1259_v58, %v661_v43  ;;  %v853_v14 = vmax.f32 %v1524_v54, 0.0  ;;  %v851_v7 = vmax.f32 %v1518_v36, 0.0  ;;  %v866_v12 = vmax.f32 %v1569_v62, 0.0 }
 0x184   :  { %v1162_v0 = vadd.f32 %v1161_v57, %v1160_v55  ;;  %v1273_v1 = vpop.f32.mrf.mxu1  ;;  %v838_v51 = vadd.f32 %v1271_v4, %v677_v61  ;;  %v830_v55 = vadd.f32 %v1265_v46, %v669_v39  ;;  %v817_v21 = vadd.f32 %v1256_v26, %v656_v20 }
 0x185   :  { %v1274_v53 = vadd.f32 %v1273_v1, %v1272_v56  ;;  %v870_v23 = vmax.f32 %v822_v22, 0.0  ;;  %v814_v9 = vadd.f32 %v1253_v17, %v653_v16  ;;  %v849_v54 = vmax.f32 %v1512_v19, 0.0  ;;  %v1650_v56 = vld [vmem:[#allocation18_spill] sm:$0xff] }
 0x186   :  { %v680_v6 = vadd.f32 %v1162_v0, %v1494_v34  ;;  %v874_v50 = vmax.f32 %v838_v51, 0.0  ;;  %v872_v59 = vmax.f32 %v830_v55, 0.0  ;;  %v869_v29 = vmax.f32 %v817_v21, 0.0 }
 0x187   :  { %v868_v18 = vmax.f32 %v814_v9, 0.0  ;;  %v852_v34 = vmax.f32 %v1521_v45, 0.0  ;;  %v864_v45 = vmax.f32 %v1563_v38, 0.0  ;;  %v863_v36 = vmax.f32 %v1560_v25, 0.0  ;;  %v1649_v38 = vld [vmem:[#allocation15_spill] sm:$0xff]  ;;  %v1651_v25 = vld [vmem:[#allocation14_spill] sm:$0xff] }
 0x188   :  { %v841_v5 = vadd.f32 %v1274_v53, %v680_v6  ;;  %v873_v53 = vmax.f32 %v833_v41, 0.0  ;;  %v847_v62 = vmax.f32 %v1506_v3, 0.0  ;;  %v862_v27 = vmax.f32 %v1646_v32, 0.0  ;;  %v1652_v3 = vld [vmem:[#allocation17_spill] sm:$0xff] }
 0x189   :  { %v861_v19 = vmax.f32 %v1648_v40, 0.0  ;;  %v845_v42 = vmax.f32 %v1649_v38, 0.0  ;;  %v860_v11 = vmax.f32 %v1650_v56, 0.0  ;;  %v844_v57 = vmax.f32 %v1651_v25, 0.0 }
 0x18a   :  { %v875_v44 = vmax.f32 %v841_v5, 0.0  ;;  %v1262_v5 = vadd.f32 %v1261_v30, %v1260_v28  ;;  %v865_v30 = vmax.f32 %v1566_v49, 0.0  ;;  %v1647_v49 = vld [vmem:[#allocation16_spill] sm:$0xff]  ;;  %v1445_v46 = vmov 1966171168  }
 0x18b   :  { %v846_v35 = vmax.f32 %v1647_v49, 0.0  ;;  %v973_v55 = vshrl.u32 %v972_v31, 7 }
 0x18c   :  { %1275 = vmatprep.subr.mxu0 %v875_v44  ;;  %v825_v51 = vadd.f32 %v1262_v5, %v664_v33  ;;  %v962_v5 = vstv %s64_s14 }
 0x18d   :  { %1276 = vmatpush3.xpose.msra.mxu0 %v859_v48 }
 0x18e   :  { %1277 = vmatprep.subr.mxu0 %v874_v50  ;;  %v871_v28 = vmax.f32 %v825_v51, 0.0 }
 0x191   :  { %1278 = vmatpush3.xpose.msra.mxu0 %v858_v52  ;;  %v970_v52 = vunpack.c.l.s4 %v1445_v46 }
 0x192   :  { %1279 = vmatprep.subr.mxu0 %v873_v53  ;;  %v961_v53 = vld [vmem:[%s1636_s5] sm:$0x3]  ;;  %s1410_s5 = scalar_lea.vmem %s1003_s19, 32 }
 0x193   :  { %v971_v33 = vunpack.c.0.s8 %v970_v52  ;;  %v963_v24 = vsub.f32 %v961_v53, %v962_v5  ;;  %p1411_p10 = scmp.ne.s32.totalorder %s1003_s19, %s1410_s5  ;;  %p1416_p12 = scmp.lt.s32.totalorder %s1410_s5, %s1410_s5 }
 0x195   :  { %1280 = vmatpush3.xpose.msra.mxu0 %v857_v47  ;;  %v974_v43 = vsub.s32 %v971_v33, %v973_v55  ;;  %p1417_p13 = por %p1416_p12, %p1415_p11 }
 0x196   :  { %1281 = vmatprep.subr.mxu0 %v872_v59  ;;  %v964_v59 = vstv %s1013_s15 }
 0x197   :  { %p1418_p0 = pnand %p1417_p13, %p1411_p10 }
 0x199   :  { %1282 = vmatpush3.xpose.msra.mxu0 %v856_v37  ;;  %v965_v37 = vmul.f32 %v964_v59, %v963_v24 }
 0x19a   :  { %1283 = vmatprep.subr.mxu0 %v871_v28 }
 0x19d   :  { %1284 = vmatpush3.xpose.msra.mxu0 %v855_v13 }
 0x19e   :  { %1285 = vmatprep.subr.mxu0 %v870_v23 }
 0x1a1   :  { %1286 = vmatpush3.xpose.msra.mxu0 %v854_v2 }
 0x1a2   :  { %1287 = vmatprep.subr.mxu0 %v869_v29 }
 0x1a5   :  { %1288 = vmatpush3.xpose.msra.mxu0 %v853_v14 }
 0x1a6   :  { %1289 = vmatprep.subr.mxu0 %v868_v18 }
 0x1a9   :  { %1290 = vmatpush3.xpose.msra.mxu0 %v852_v34 }
 0x1aa   :  { %1291 = vmatprep.subr.mxu0 %v867_v8 }
 0x1ad   :  { %1292 = vmatpush3.xpose.msra.mxu0 %v851_v7 }
 0x1ae   :  { %1293 = vmatprep.subr.mxu0 %v866_v12 }
 0x1b1   :  { %1294 = vmatpush3.xpose.msra.mxu0 %v850_v63 }
 0x1b2   :  { %1295 = vmatprep.subr.mxu0 %v865_v30 }
 0x1b5   :  { %1296 = vmatpush3.xpose.msra.mxu0 %v849_v54 }
 0x1b6   :  { %1297 = vmatprep.subr.mxu0 %v864_v45 }
 0x1b9   :  { %1298 = vmatpush3.xpose.msra.mxu0 %v848_v10 }
 0x1ba   :  { %1299 = vmatprep.subr.mxu0 %v863_v36 }
 0x1bd   :  { %1300 = vmatpush3.xpose.msra.mxu0 %v847_v62 }
 0x1be   :  { %1301 = vmatprep.subr.mxu0 %v862_v27 }
 0x1c1   :  { %1302 = vmatpush3.xpose.msra.mxu0 %v846_v35 }
 0x1c2   :  { %1303 = vmatprep.subr.mxu0 %v861_v19 }
 0x1c5   :  { %1304 = vmatpush3.xpose.msra.mxu0 %v845_v42 }
 0x1c6   :  { %1305 = vmatprep.subr.mxu0 %v860_v11 }
 0x1c9   :  { %1306 = vmatpush3.xpose.msra.mxu0 %v844_v57 }
 0x1cc   :  { %1308 = vmatmul.mubr.f32.vlgmr.msra.gmra.mxu0 %v1652_v3 }
 0x28c   :  { %v944_v61 = vpop.f32.mrf.mxu0 }
 0x28d   :  { %v945_v0 = vadd.f32 %v944_v61, %v877_v60 }
 0x28e   :  { %v946_v1 = vpop.f32.mrf.mxu0 }
 0x28f   :  { %v1048_v4 = vmul.f32 -1.442695, %v945_v0  ;;  %v947_v6 = vadd.f32 %v946_v1, %v877_v60 }
 0x291   :  { %1350 = vpow2.f32 %v1048_v4  ;;  %v1049_v44 = vmul.f32 -1.442695, %v947_v6 }
 0x293   :  { %1352 = vpow2.f32 %v1049_v44 }
 0x29e   :  { %v1351_v48 = vpop.eup %1350 }
 0x29f   :  { %v955_v39 = vadd.f32 1.0, %v1351_v48 }
 0x2a0   :  { %v1353_v41 = vpop.eup %1352 }
 0x2a1   :  { %v956_v50 = vadd.f32 1.0, %v1353_v41  ;;  %1354 = vrcp.f32 %v955_v39 }
 0x2a3   :  { %1356 = vrcp.f32 %v956_v50 }
 0x2ae   :  { %v1355_v47 = vpop.eup %1354 }
 0x2b0   :  { %v1357_v51 = vpop.eup %1356 }
 0x2b1   :  { %v968_v58 = vcombine.low %v1355_v47, %v1357_v51 }
 0x2b3   :  { %v975_v15 = vrot.slane %v968_v58, %v974_v43 }
 0x2b5   :  { %v982_v20 = vrot.slane %v975_v15, %v974_v43 }
 0x2b7   :  { %v984_v22 = vadd.f32 %v982_v20, %v965_v37 }
 0x2b9   :  { %v1050_v28 = vmul.f32 -1.442695, %v984_v22 }
 0x2bb   :  { %1358 = vpow2.f32 %v1050_v28 }
 0x2c8   :  { %v1359_v26 = vpop.eup %1358 }
 0x2c9   :  { %v988_v13 = vadd.f32 1.0, %v1359_v26 }
 0x2cb   :  { %1360 = vrcp.f32 %v988_v13 }
 0x2d8   :  { %v1361_v16 = vpop.eup %1360 }
 0x2d9   :  { %995 = vst.msk [vmem:[#allocation9] sm:$0x3] %vm993_vm0, %v1361_v16 }
 0x2da   :  { %1421 = shalt.err (!%p1418_p0)
}
 0x2db   :  { %1005 = dma.vmem_to_hbm [thread:$0]  %s1003_s19, 32, %s1637_s6, [#allocation4]  }
 0x2dc   :  { %1436 = dma.done.wait [#allocation4], 32  }
 0x2dd   :  { %1437 = vsyncadd [#allocation4], 4294967264 }
 0x2de   :  { %1009 = vsyncpa [#allocation3], 1 }
 0x2df   :  { %1010 = vsyncpa [#allocation8], 1 }
 0x2e0   :  { %1011 = vsyncpa [#allocation4], 1 }
 0x2e1   :  { %1012 = vsyncpa [#allocation5], 1 }

</bundles_post_ra>
